<compile_context>
chip_gen: v7x
topology: tpu7x:2x2x1
jax: 0.10.0
libtpu: 0.0.40
codegen_flags: <defaults>
</compile_context>

<pallas_src>
import jax
import jax.numpy as jnp
import numpy as np
from jax.experimental import pallas as pl
from jax.experimental.pallas import tpu as pltpu


def _round_up(x, m):
    return (x + m - 1) // m * m


def upsample1d_kernel(x_ref, halo_ref, w_ref, b_ref, o_ref):
    # x_ref:    (1, C, tL)     input tile, NCL layout (L on the 128-lane axis)
    # halo_ref: (1, 1, C, 2)   f32; [:, 0] = A3 of the row just before the tile,
    #                               [:, 1] = A0 of the row just after (0 at edges)
    # w_ref:    (4C, C)        packed taps: row k*C + co holds weight[:, co, k]
    # b_ref:    (C, 1)         f32 bias column (broadcasts along lanes)
    # o_ref:    (1, 2, C, tL)  plane 0 = y[2m] (even), plane 1 = y[2m+1] (odd)
    x = x_ref[0]                                     # (C, tL), native dtype
    w = w_ref[...]                                   # (4C, C)
    c, tl = x.shape

    # Single fused MXU matmul for all four conv-transpose taps, f32 accumulation.
    acc = jnp.dot(w, x, preferred_element_type=jnp.float32)      # (4C, tL)
    a0 = acc[0 * c:1 * c, :]
    a1 = acc[1 * c:2 * c, :]
    a2 = acc[2 * c:3 * c, :]
    a3 = acc[3 * c:4 * c, :]

    halo = halo_ref[0, 0]                            # (C, 2) f32
    prev_a3 = halo[:, 0:1]                           # A3 of row (m0 - 1)
    next_a0 = halo[:, 1:2]                           # A0 of row (m0 + tL)

    # Neighbour shifts along the lane (L) axis on the XLU; a width-1 lane mask
    # patches the single boundary column with the precomputed halo tap.
    col = jax.lax.broadcasted_iota(jnp.int32, (1, tl), 1)
    a3_prev = jnp.where(col == 0, prev_a3, pltpu.roll(a3, shift=1, axis=1))
    a0_next = jnp.where(col == tl - 1, next_a0,
                        pltpu.roll(a0, shift=tl - 1, axis=1))

    bias = b_ref[...]                                # (C, 1) f32
    o_ref[0, 0, :, :] = (a1 + a3_prev + bias).astype(o_ref.dtype)
    o_ref[0, 1, :, :] = (a2 + a0_next + bias).astype(o_ref.dtype)


def _vmem_budget_bytes():
    """Chip-aware VMEM budget: ~48 MiB on v7x (64 MiB/TC), ~96 MiB on v5e/v6e."""
    cap = 64 * 1024 * 1024            # conservative default (v7x per-core VMEM)
    try:
        cap = int(getattr(pltpu.get_tpu_info(), "vmem_capacity_bytes", cap))
    except Exception:                 # no TPU info available -> keep safe default
        pass
    return max(cap - max(16 * 1024 * 1024, cap // 4), 16 * 1024 * 1024)


def _per_step_vmem_bytes(tile_l, c, in_isz, out_isz):
    """Conservative per-grid-step VMEM use (double-buffered blocks + f32 temps)."""
    cs = _round_up(c, 8)
    x_blk = cs * tile_l * in_isz
    o_blk = 2 * cs * tile_l * out_isz
    w_blk = _round_up(4 * c, 8) * _round_up(c, 128) * in_isz
    halo_blk = cs * 128 * 4
    bias_blk = cs * 128 * 4
    # TODO(synk): pl.Buffered(1) on the constant weight/bias specs would drop
    # their second buffer; until then everything is double-buffered.
    buffered = 2 * (x_blk + o_blk + w_blk + halo_blk + bias_blk)
    interm = (4 * c + 4 * c) * tile_l * 4            # acc + shifted taps/results
    return buffered + interm


def _choose_tile_l(L, c, in_isz, out_isz, budget, batch, cap=2048):
    """Largest multiple-of-128 L tile fitting the VMEM budget, bounded padding."""
    max_fit = cap
    while max_fit > 128 and _per_step_vmem_bytes(max_fit, c, in_isz, out_isz) > budget:
        max_fit -= 128
    max_waste = max(128, L // 8)
    tile = 128
    for t in range(max_fit, 127, -128):
        if _round_up(L, t) - L <= max_waste:
            tile = t
            break
    # v7x has two TensorCores: with a single batch prefer >=2 grid steps over
    # one full-L tile so both cores get work (no-op for v5e/v6e).
    if batch == 1 and tile > 128 and _round_up(L, tile) == tile:
        tile = _round_up(-(-L // 2), 128)
    return tile, _round_up(L, tile)


def upsample1d(x_ncl, weight, bias, *, tile_l=None, compute_dtype=None):
    """ConvTranspose1d(dim, dim, kernel_size=4, stride=2, padding=1).

    x_ncl:  (B, Cin, L)     PyTorch NCL layout
    weight: (Cin, Cout, 4)  PyTorch ConvTranspose1d weight
    bias:   (Cout,)
    returns (B, Cout, 2*L), same dtype as x_ncl.
    """
    B, C, L = x_ncl.shape
    cin, cout, K = weight.shape
    assert K == 4 and cin == C and cout == C, (weight.shape, x_ncl.shape)

    out_dtype = x_ncl.dtype
    if compute_dtype is not None:                    # optional bf16 traffic saver
        x_ncl = x_ncl.astype(compute_dtype)
    in_isz = jnp.dtype(x_ncl.dtype).itemsize
    out_isz = jnp.dtype(out_dtype).itemsize

    budget = _vmem_budget_bytes()
    if tile_l is None:
        tile_l, L_pad = _choose_tile_l(L, C, in_isz, out_isz, budget, B)
    else:
        assert tile_l % 128 == 0, "tile_l must be a multiple of the 128-lane width"
        L_pad = _round_up(L, tile_l)
    n_tiles = L_pad // tile_l

    # Zero-pad L to a whole number of lane-aligned tiles (padded rows contribute
    # nothing to real outputs; their own outputs are sliced off below).
    x_pad = x_ncl if L_pad == L else jnp.pad(
        x_ncl, ((0, 0), (0, 0), (0, L_pad - L)))

    # Packed taps: w_packed[k*C + co, ci] = weight[ci, co, k]  ->  (4C, C)
    w_packed = jnp.transpose(weight, (2, 1, 0)).reshape(4 * C, C).astype(x_pad.dtype)
    b_col = bias.reshape(C, 1).astype(jnp.float32)

    # Per-tile boundary tap contributions (tiny f32 einsum; removes the in-kernel
    # halo matmul).  halo[..., 0] = A3 of the row before the tile (0 for tile 0),
    # halo[..., 1] = A0 of the row after the tile (0 past the end of the sequence).
    zcol = jnp.zeros((B, C, 1), x_pad.dtype)
    last_cols = x_pad[:, :, tile_l - 1::tile_l]                  # (B, C, nT)
    first_cols = x_pad[:, :, ::tile_l]                           # (B, C, nT)
    prev_cols = jnp.concatenate([zcol, last_cols[:, :, :-1]], axis=2)
    next_cols = jnp.concatenate([first_cols[:, :, 1:], zcol], axis=2)
    w3 = weight[:, :, 3].astype(jnp.float32)
    w0 = weight[:, :, 0].astype(jnp.float32)
    halo = jnp.stack(
        [jnp.einsum("bct,cd->btd", prev_cols.astype(jnp.float32), w3),
         jnp.einsum("bct,cd->btd", next_cols.astype(jnp.float32), w0)],
        axis=-1)                                                 # (B, nT, C, 2) f32

    per_step = _per_step_vmem_bytes(tile_l, C, in_isz, out_isz)
    vmem_limit = int(min(budget, max(32 * 1024 * 1024, per_step)))

    cost = pl.CostEstimate(
        flops=2 * B * L_pad * 4 * C * C,
        transcendentals=0,
        bytes_accessed=int(x_pad.size * in_isz + halo.size * 4
                           + w_packed.size * in_isz + b_col.size * 4
                           + B * 2 * C * L_pad * out_isz),
    )

    planes = pl.pallas_call(
        upsample1d_kernel,
        out_shape=jax.ShapeDtypeStruct((B, 2, C, L_pad), out_dtype),
        grid_spec=pltpu.PrefetchScalarGridSpec(
            num_scalar_prefetch=0,
            grid=(B, n_tiles),
            in_specs=[
                pl.BlockSpec((1, C, tile_l), lambda b, t: (b, 0, t)),
                pl.BlockSpec((1, 1, C, 2), lambda b, t: (b, t, 0, 0)),
                pl.BlockSpec((4 * C, C), lambda b, t: (0, 0)),
                pl.BlockSpec((C, 1), lambda b, t: (0, 0)),
            ],
            out_specs=pl.BlockSpec((1, 2, C, tile_l), lambda b, t: (b, 0, 0, t)),
        ),
        compiler_params=pltpu.CompilerParams(
            dimension_semantics=("parallel", "parallel"),
            vmem_limit_bytes=vmem_limit,
        ),
        cost_estimate=cost,
    )(x_pad, halo, w_packed, b_col)

    # (B, 2, C, L_pad) even/odd planes -> (B, C, L_pad, 2) -> free merge to 2*L_pad.
    y = jnp.transpose(planes, (0, 2, 3, 1)).reshape(B, C, 2 * L_pad)
    return y if L_pad == L else y[:, :, :2 * L]


def ref_conv_transpose1d(x, weight, bias):
    """Pure-JAX reference matching PyTorch ConvTranspose1d(k=4, s=2, p=1)."""
    K = weight.shape[2]
    w_t = jnp.transpose(jnp.flip(weight, axis=2), (1, 0, 2))     # (Cout, Cin, K)
    pad = K - 1 - 1                                              # k - 1 - padding
    y = jax.lax.conv_general_dilated(
        x, w_t,
        window_strides=(1,),
        padding=[(pad, pad)],
        lhs_dilation=(2,),
        rhs_dilation=(1,),
        dimension_numbers=("NCH", "OIH", "NCH"),
    )
    return y + bias[None, :, None]


if __name__ == "__main__":
    key = jax.random.PRNGKey(0)

    def check(B, dim, L, tile_l=None, tag=0):
        k = jax.random.fold_in(key, tag)
        kx, kw, kb = jax.random.split(k, 3)
        x = jax.random.normal(kx, (B, dim, L), dtype=jnp.float32)
        # ConvTranspose1d(dim, dim, 4) weight shape: (in_channels, out_channels, K)
        weight = 0.1 * jax.random.normal(kw, (dim, dim, 4), dtype=jnp.float32)
        bias = 0.05 * jax.random.normal(kb, (dim,), dtype=jnp.float32)

        y = jax.block_until_ready(upsample1d(x, weight, bias, tile_l=tile_l))
        y_ref = jax.block_until_ready(ref_conv_transpose1d(x, weight, bias))
        assert y.shape == (B, dim, 2 * L), y.shape
        np.testing.assert_allclose(np.asarray(y), np.asarray(y_ref),
                                   rtol=1e-5, atol=1e-5)

    # Small module-spec shape (single lane-aligned tile, auto tile choice).
    check(2, 8, 16, tag=1)
    # Lane-aligned multi-tile path: exercises the precomputed halo contributions.
    check(2, 16, 256, tile_l=128, tag=2)
    # Ragged L with zero-padding to the tile + batch==1 grid.
    check(1, 8, 200, tile_l=128, tag=3)

    print("KERNEL_OK")
</pallas_src>

<mosaic_0001>
module attributes {stable_mosaic.version = 11 : i64} {
  func.func @upsample1d_kernel(%arg0: i32, %arg1: i32, %arg2: memref<1x8x128xf32, #tpu.memory_space<vmem>>, %arg3: memref<1x1x8x2xf32, #tpu.memory_space<vmem>>, %arg4: memref<32x8xf32, #tpu.memory_space<vmem>>, %arg5: memref<8x1xf32, #tpu.memory_space<vmem>>, %arg6: memref<1x2x8x128xf32, #tpu.memory_space<vmem>>) attributes {dimension_semantics = [#tpu.dimension_semantics<parallel>, #tpu.dimension_semantics<parallel>], iteration_bounds = array<i64: 2, 1>, scalar_prefetch = 0 : i64, scratch_operands = 0 : i64, tpu.core_type = #tpu.core_type<tc>, window_params = [{transform_indices = @transform_0, window_bounds = array<i64: 1, 8, 128>}, {transform_indices = @transform_1, window_bounds = array<i64: 1, 1, 8, 2>}, {pipeline_mode = #tpu.pipeline_mode<synchronous>, transform_indices = @transform_2, window_bounds = array<i64: 32, 8>}, {pipeline_mode = #tpu.pipeline_mode<synchronous>, transform_indices = @transform_3, window_bounds = array<i64: 8, 1>}, {transform_indices = @transform_4, window_bounds = array<i64: 1, 2, 8, 128>}]} {
    %c0 = arith.constant 0 : index
    %c0_0 = arith.constant 0 : index
    %c0_1 = arith.constant 0 : index
    %0 = vector.load %arg2[%c0, %c0_0, %c0_1] : memref<1x8x128xf32, #tpu.memory_space<vmem>>, vector<1x8x128xf32>
    %1 = vector.shape_cast %0 : vector<1x8x128xf32> to vector<8x128xf32>
    %c0_2 = arith.constant 0 : index
    %c0_3 = arith.constant 0 : index
    %2 = vector.load %arg4[%c0_2, %c0_3] : memref<32x8xf32, #tpu.memory_space<vmem>>, vector<32x8xf32>
    %cst = arith.constant dense<0.000000e+00> : vector<32x128xf32>
    %3 = tpu.matmul %2, %1, %cst {dimension_numbers = #tpu.dot_dimension_numbers<[1], [0], [0], [1], [0, 0, 1, 1], [], []>} : vector<32x8xf32>, vector<8x128xf32>, vector<32x128xf32> -> vector<32x128xf32>
    %4 = vector.extract_strided_slice %3 {offsets = [0, 0], sizes = [8, 128], strides = [1, 1]} : vector<32x128xf32> to vector<8x128xf32>
    %5 = vector.extract_strided_slice %3 {offsets = [8, 0], sizes = [8, 128], strides = [1, 1]} : vector<32x128xf32> to vector<8x128xf32>
    %6 = vector.extract_strided_slice %3 {offsets = [16, 0], sizes = [8, 128], strides = [1, 1]} : vector<32x128xf32> to vector<8x128xf32>
    %7 = vector.extract_strided_slice %3 {offsets = [24, 0], sizes = [8, 128], strides = [1, 1]} : vector<32x128xf32> to vector<8x128xf32>
    %c0_4 = arith.constant 0 : index
    %c0_5 = arith.constant 0 : index
    %c0_6 = arith.constant 0 : index
    %c0_7 = arith.constant 0 : index
    %8 = vector.load %arg3[%c0_4, %c0_5, %c0_6, %c0_7] : memref<1x1x8x2xf32, #tpu.memory_space<vmem>>, vector<1x1x8x2xf32>
    %9 = vector.shape_cast %8 : vector<1x1x8x2xf32> to vector<8x2xf32>
    %10 = vector.extract_strided_slice %9 {offsets = [0, 0], sizes = [8, 1], strides = [1, 1]} : vector<8x2xf32> to vector<8x1xf32>
    %11 = vector.extract_strided_slice %9 {offsets = [0, 1], sizes = [8, 1], strides = [1, 1]} : vector<8x2xf32> to vector<8x1xf32>
    %12 = tpu.iota {dimensions = array<i32: 1>} : vector<1x128xi32>
    %c0_i32 = arith.constant 0 : i32
    %13 = vector.broadcast %c0_i32 : i32 to vector<1x128xi32>
    %14 = arith.cmpi eq, %12, %13 : vector<1x128xi32>
    %c1_i32 = arith.constant 1 : i32
    %15 = tpu.dynamic_rotate %7 by %c1_i32 dim 1 : vector<8x128xf32>, i32 -> vector<8x128xf32>
    %16 = vector.shape_cast %14 : vector<1x128xi1> to vector<1x128xi1>
    %17 = vector.broadcast %16 : vector<1x128xi1> to vector<8x128xi1>
    %18 = vector.shape_cast %10 : vector<8x1xf32> to vector<8x1xf32>
    %19 = vector.broadcast %18 : vector<8x1xf32> to vector<8x128xf32>
    %20 = arith.select %17, %19, %15 : vector<8x128xi1>, vector<8x128xf32>
    %c127_i32 = arith.constant 127 : i32
    %21 = vector.broadcast %c127_i32 : i32 to vector<1x128xi32>
    %22 = arith.cmpi eq, %12, %21 : vector<1x128xi32>
    %c127_i32_8 = arith.constant 127 : i32
    %23 = tpu.dynamic_rotate %4 by %c127_i32_8 dim 1 : vector<8x128xf32>, i32 -> vector<8x128xf32>
    %24 = vector.shape_cast %22 : vector<1x128xi1> to vector<1x128xi1>
    %25 = vector.broadcast %24 : vector<1x128xi1> to vector<8x128xi1>
    %26 = vector.shape_cast %11 : vector<8x1xf32> to vector<8x1xf32>
    %27 = vector.broadcast %26 : vector<8x1xf32> to vector<8x128xf32>
    %28 = arith.select %25, %27, %23 : vector<8x128xi1>, vector<8x128xf32>
    %c0_9 = arith.constant 0 : index
    %c0_10 = arith.constant 0 : index
    %29 = vector.load %arg5[%c0_9, %c0_10] : memref<8x1xf32, #tpu.memory_space<vmem>>, vector<8x1xf32>
    %30 = arith.addf %5, %20 : vector<8x128xf32>
    %31 = vector.broadcast %29 : vector<8x1xf32> to vector<8x128xf32>
    %32 = arith.addf %30, %31 : vector<8x128xf32>
    %c0_11 = arith.constant 0 : index
    %c0_12 = arith.constant 0 : index
    %c0_13 = arith.constant 0 : index
    %c0_14 = arith.constant 0 : index
    %33 = vector.load %arg6[%c0_11, %c0_12, %c0_13, %c0_14] : memref<1x2x8x128xf32, #tpu.memory_space<vmem>>, vector<1x1x8x128xf32>
    %34 = vector.shape_cast %33 : vector<1x1x8x128xf32> to vector<8x128xf32>
    %35 = vector.shape_cast %32 : vector<8x128xf32> to vector<1x1x8x128xf32>
    tpu.vector_store %arg6[%c0_11, %c0_12, %c0_13, %c0_14], %35 {strides = array<i32>} : memref<1x2x8x128xf32, #tpu.memory_space<vmem>>, vector<1x1x8x128xf32>,
    %36 = arith.addf %6, %28 : vector<8x128xf32>
    %37 = vector.broadcast %29 : vector<8x1xf32> to vector<8x128xf32>
    %38 = arith.addf %36, %37 : vector<8x128xf32>
    %c0_15 = arith.constant 0 : index
    %c1 = arith.constant 1 : index
    %c0_16 = arith.constant 0 : index
    %c0_17 = arith.constant 0 : index
    %39 = vector.load %arg6[%c0_15, %c1, %c0_16, %c0_17] : memref<1x2x8x128xf32, #tpu.memory_space<vmem>>, vector<1x1x8x128xf32>
    %40 = vector.shape_cast %39 : vector<1x1x8x128xf32> to vector<8x128xf32>
    %41 = vector.shape_cast %38 : vector<8x128xf32> to vector<1x1x8x128xf32>
    tpu.vector_store %arg6[%c0_15, %c1, %c0_16, %c0_17], %41 {strides = array<i32>} : memref<1x2x8x128xf32, #tpu.memory_space<vmem>>, vector<1x1x8x128xf32>,
    return
  }
  func.func @transform_0(%arg0: i32, %arg1: i32) -> (i32, i32, i32) {
    %c0_i32 = arith.constant 0 : i32
    %c0_i32_0 = arith.constant 0 : i32
    return %arg0, %c0_i32, %arg1 : i32, i32, i32
  }
  func.func @transform_1(%arg0: i32, %arg1: i32) -> (i32, i32, i32, i32) {
    %c0_i32 = arith.constant 0 : i32
    %c0_i32_0 = arith.constant 0 : i32
    %c0_i32_1 = arith.constant 0 : i32
    return %arg0, %arg1, %c0_i32, %c0_i32_0 : i32, i32, i32, i32
  }
  func.func @transform_2(%arg0: i32, %arg1: i32) -> (i32, i32) {
    %c0_i32 = arith.constant 0 : i32
    %c0_i32_0 = arith.constant 0 : i32
    %c0_i32_1 = arith.constant 0 : i32
    return %c0_i32, %c0_i32_0 : i32, i32
  }
  func.func @transform_3(%arg0: i32, %arg1: i32) -> (i32, i32) {
    %c0_i32 = arith.constant 0 : i32
    %c0_i32_0 = arith.constant 0 : i32
    %c0_i32_1 = arith.constant 0 : i32
    return %c0_i32, %c0_i32_0 : i32, i32
  }
  func.func @transform_4(%arg0: i32, %arg1: i32) -> (i32, i32, i32, i32) {
    %c0_i32 = arith.constant 0 : i32
    %c0_i32_0 = arith.constant 0 : i32
    %c0_i32_1 = arith.constant 0 : i32
    return %arg0, %c0_i32, %c0_i32_0, %arg1 : i32, i32, i32, i32
  }
}

</mosaic_0001>

<bundles_post_ra>
// kernel: tpu_custom_call.1
= control target key start
LH: loop header
LB: loop body
LE: loop exit
PB: predicated region body
PF: predicated region fallthrough
CT: control target
= control target key end

     0   :  { %9 = vsyncpa [#allocation3], 0  ;;  %s839_s0 = inlined_call_operand.vmem [shape: f32[2,8,128], index: 0, kind: input, shape index: {}]   ;;  %s840_s1 = inlined_call_operand.vmem [shape: f32[2,1,8,2], index: 1, kind: input, shape index: {}]   ;;  %s841_s2 = inlined_call_operand.vmem [shape: f32[32,8], index: 2, kind: input, shape index: {}]   ;;  %s842_s3 = inlined_call_operand.vmem [shape: f32[8,1], index: 3, kind: input, shape index: {}]   ;;  %s843_s4 = inlined_call_operand.hbm [shape: f32[2,2,8,128], index: 4, kind: output, shape index: {}]  }
   0x1   :  { %11 = vsyncpa [#allocation3 + $0x1], 0  ;;  %s702_s15 = smov 0   ;;  %s704_s16 = smov 0  }
   0x2   :  { %s706_s17 = smov 0   ;;  %s708_s18 = smov 0  }
   0x3   :  { %s710_s19 = smov 0   ;;  %s712_s20 = smov 0  }
   0x4 LB: > { %s491_s21 = sadd.s32 4294967295, %s668_s20   ;;  %s492_s22 = sadd.s32 4294967294, %s668_s20   ;;  %s668_s20 = sphi %s712_s20, %s17_s20   ;;  %s664_s19 = sphi %s710_s19, %s850_s19   ;;  %s660_s18 = sphi %s708_s18, %s849_s18   ;;  %s656_s17 = sphi %s706_s17, %s848_s17   ;;  %s652_s16 = sphi %s704_s16, %s847_s16   ;;  %s648_s15 = sphi %s702_s15, %s846_s15  }
   0x5   : > { %s29_s23 = sadd.s32 1, %s664_s19  ;;  %s136_s24 = sadd.s32 1, %s656_s17 }
   0x6   : > { %p31_p0 = scmp.ge.s32.totalorder %s29_s23, 2  ;;  %p146_p1 = scmp.ne.s32.totalorder %s656_s17, %s652_s16 }
   0x7   : > { %p147_p2 = scmp.eq.s32.totalorder %s491_s21, 1  ;;  %p152_p3 = scmp.ne.s32.totalorder %s652_s16, %s648_s15 }
   0x8   : > { %s852_s23 = smov (%p31_p0, %s29_s23), 0  ;;  %p153_p5 = scmp.eq.s32.totalorder %s492_s22, 1 }
   0x9   : > { %p742_p4 = por %p147_p2, %p146_p1  ;;  %s131_s26 = ssub.s32 %s664_s19, %s852_s23 }
   0xa   : > { %p495_p6 = scmp.ge.s32.totalorder %s668_s20, 1  ;;  %p134_p7 = scmp.eq.s32.totalorder %s131_s26, 0 }
   0xb   : > { %p749_p8 = por %p153_p5, %p152_p3  ;;  %p197_p9 = scmp.lt.s32.totalorder %s668_s20, 3 }
   0xc   : > { %s755_s28 = scalar_select %p134_p7, %s656_s17, %s136_s24  }
   0xd   : > { %p198_p10 = pnand %p495_p6, %p197_p9 }
   0xe   : > { %p232_p11 = scmp.lt.s32.totalorder (!%p198_p10), %s660_s18, 1  ;;  %v249_v0 = vld [vmem:[%s841_s2 + $0x10] sm:$0xff] (!%p198_p10)  ;;  %vm251_vm0 = vcmask (!%p198_p10), 64512   ;;  %v247_v1 = vld [vmem:[%s841_s2] sm:$0xff] (!%p198_p10)  ;;  %v670_v3 = vmov (!%p198_p10), 0   ;;  %v250_v5 = vld [vmem:[%s841_s2 + $0x18] sm:$0xff] (!%p198_p10)  ;;  %v350_v13 = vlaneseq (!%p198_p10) }
   0xf   : > { %201 = sbr.rel (%p198_p10) target bundleno = 380 (0x17c), region = 36  ;;  %520 = vmatprep.mubr.msk.f32.mxu1 (!%p198_p10), %vm251_vm0, %v249_v0  ;;  %517 = vmatprep.mubr.msk.f32.mxu0 (!%p198_p10), %vm251_vm0, %v247_v1  ;;  %v373_v2 = vld [vmem:[%s842_s3] sm:$0xff] (!%p198_p10)  ;;  %v248_v6 = vld [vmem:[%s841_s2 + $0x8] sm:$0xff] (!%p198_p10)  ;;  %v671_v8 = vmov (!%p198_p10), 1   ;;  %s672_s5 = smov (!%p198_p10), 1  }
  0x10   : > { %588 = vset.pattern.permute.xlu1 (!%p198_p10), %v670_v3  ;;  %586 = vset.pattern.permute.xlu0 (!%p198_p10), %v670_v3  ;;  %s673_s6 = smov (!%p198_p10), 127   ;;  %v351_v15 = vand.u32 (!%p198_p10), 127, %v350_v13  ;;  %s229_s7 = sand.u32 (!%p198_p10), 1, %s652_s16  }
  0x11   : > { %377 = vperm.xlu1 (!%p198_p10), %588, %v373_v2   ;;  %s496_s8 = sshll.u32 (!%p198_p10), %s229_s7, 4  ;;  %s509_s11 = sshll.u32 (!%p198_p10), %s660_s18, 8 }
  0x12   : > { %vm352_vm1 = vcmp.eq.s32.totalorder (!%p198_p10), %v351_v15, 0  ;;  %vm363_vm2 = vcmp.eq.s32.totalorder (!%p198_p10), %v351_v15, 127  ;;  %s791_s14 = scalar_lea.hbm (!%p198_p10), %s843_s4, %s509_s11  ;;  %s793_s21 = scalar_lea.sflag (!%p198_p10), [#allocation3], %s229_s7 }
  0x16   : > { %s233_s9 = scalar_select %p232_p11, %s660_s18, 1 }
  0x17   : > { %s674_s18 = smov [#allocation2]  }
  0x18   : > { %s497_s10 = sshll.u32 %s233_s9, 3  ;;  %s231_s9 = scalar_lea.vmem [#allocation2], %s496_s8 }
  0x19   : > { %s238_s13 = scalar_lea.vmem %s839_s0, %s497_s10  ;;  %s245_s22 = scalar_lea.vmem %s840_s1, %s497_s10 }
  0x1a   : > { %v246_v4 = vld [vmem:[%s238_s13] sm:$0xff]  ;;  %s401_s10 = sshll.u32 %s231_s9, 4  ;;  %s594_s24 = sshll.u32 %s674_s18, 4  ;;  %s786_s10 = int_to_ptr.vmem [resolvable:$true] %s401_s10  ;;  %s595_s24 = int_to_ptr.vmem [resolvable:$false] %s594_s24 }
  0x1b   : > { %523 = vmatprep.subr.mxu1 %v246_v4  ;;  %515 = vmatprep.subr.mxu0 %v246_v4  ;;  %v349_v7 = vld [vmem:[%s245_s22] sm:$0xff]  ;;  %s590_s22 = scalar_lea.vmem %s786_s10, 256  ;;  %s596_s26 = scalar_lea.vmem %s595_s24, 512 }
  0x1c   : > { %524 = vmatpush3.msra.mxu1 %v246_v4  ;;  %516 = vmatpush3.msra.mxu0 %v246_v4  ;;  %p591_p12 = scmp.ne.s32.totalorder %s786_s10, %s590_s22  ;;  %p597_p1 = scmp.lt.s32.totalorder %s786_s10, %s595_s24 }
  0x1d   : > { %521 = vmatmul.mubr.msk.f32.vlgmr.msra.gmra.mrb[0].mxu1 %vm251_vm0, %v250_v5  ;;  %518 = vmatmul.mubr.msk.f32.vlgmr.msra.gmra.mrb[0].mxu0 %vm251_vm0, %v248_v6  ;;  %p598_p2 = scmp.lt.s32.totalorder %s596_s26, %s590_s22 }
  0x1e   : > { %359 = vperm.xlu0 %586, %v349_v7   ;;  %p592_p13 = pnand %p591_p12, %p742_p4 }
  0x1f   : > { %p599_p3 = por %p598_p2, %p597_p1 }
  0x20   : > { %p593_p0 = pneg %p592_p13 }
  0x22   : > { %587 = vset.pattern.permute.xlu0 %v671_v8  ;;  %p600_p5 = pnand %p599_p3, %p593_p0 }
  0x23   : > { %369 = vperm.xlu0 %587, %v349_v7  }
  0x27   : > { %589 = vset.pattern.permute.xlu0 %v670_v3 }
  0x90   : > { %v378_v14 = vpop.permute.xlu1 %377 }
  0x9d   : > { %v360_v16 = vpop.permute.xlu0 %359 }
  0xa2   : > { %v370_v20 = vpop.permute.xlu0 %369 }
  0xf0   : > { %v522_v9 = vpop.f32.mrb[0].mxu1  ;;  %v519_v10 = vpop.f32.mrb[0].mxu0 }
  0xf1   : > { %353 = vrot.lane.b32.xlu1 %v522_v9, %s672_s5  ;;  %v340_v11 = vpop.f32.mrb[1].mxu1  ;;  %v330_v12 = vpop.f32.mrb[1].mxu0 }
  0xf5   : > { %364 = vrot.lane.b32.xlu1 %v330_v12, %s673_s6 }
 0x163   : > { %v354_v17 = vpop.permute.xlu1 %353 }
 0x164   : > { %v362_v18 = vsel %vm352_vm1, %v360_v16, %v354_v17 }
 0x165   : > { %v374_v19 = vadd.f32 %v519_v10, %v362_v18 }
 0x167   : > { %v380_v21 = vadd.f32 %v378_v14, %v374_v19  ;;  %v365_v22 = vpop.permute.xlu1 %364 }
 0x168   : > { %v372_v23 = vsel %vm363_vm2, %v370_v20, %v365_v22 }
 0x169   : > { %381 = vst [vmem:[%s231_s9] sm:$0xff] %v380_v21  ;;  %v382_v24 = vadd.f32 %v372_v23, %v340_v11 }
 0x16b   : > { %v383_v25 = vadd.f32 %v382_v24, %v378_v14 }
 0x16d   : > { %503 = vst [vmem:[%s231_s9 + $0x8] sm:$0xff] %v383_v25 }
 0x16e   : > { %603 = shalt.err (!%p600_p5)
}
 0x16f   : > { %s604_s29 = scalar_lea.hbm %s791_s14, 256  ;;  %s608_s6 = scalar_lea.hbm %s843_s4, 512 }
 0x170   : > { %p605_p6 = scmp.ne.s32.totalorder %s791_s14, %s604_s29  ;;  %p609_p10 = scmp.lt.u32.totalorder %s791_s14, %s843_s4 }
 0x171   : > { %p610_p11 = scmp.lt.u32.totalorder %s608_s6, %s604_s29  ;;  %p612_p13 = scmp.lt.u32.totalorder %s604_s29, %s791_s14 }
 0x172   : > { %p606_p7 = pnand %p605_p6, %p742_p4 }
 0x173   : > { %p611_p12 = por %p610_p11, %p609_p10 }
 0x174   : > { %p607_p9 = pneg %p606_p7 }
 0x175   : > { %p613_p0 = por %p612_p13, %p611_p12 }
 0x177   : > { %p614_p1 = pnand %p613_p0, %p607_p9 }
 0x179   : > { %617 = shalt.err (!%p614_p1)
}
 0x17a   : > { %s675_s9 = smov 128   ;;  %s676_s11 = smov 8  }
 0x17b   : > { %525 = dma.vmem_to_hbm [thread:$0]  (%p742_p4), %s786_s10, 256, %s791_s14, %s793_s21, %s675_s9, %s675_s9, %s676_s11  }
 0x17c PF: > { %p531_p2 = scmp.ge.s32.totalorder %s668_s20, 2  ;;  %s416_s12 = sand.u32 1, %s648_s15  }
 0x17d   : > { %s417_s13 = scalar_lea.sflag [#allocation3], %s416_s12 }
 0x17e   : > { %p528_p3 = pnand %p531_p2, %p749_p8 }
 0x180   : > { %643 = dma.done.wait (!%p528_p3), %s417_s13, 256  }
 0x181   : > { %645 = vsyncadd (!%p528_p3), %s417_s13, 4294967040  ;;  %s17_s20 = sadd.s32 1, %s668_s20   ;;  %s846_s15 = smov %s652_s16 }
 0x182   : > { %p14_p5 = scmp.ge.s32.totalorder %s17_s20, 4   ;;  %s847_s16 = smov %s656_s17 }
 0x183   : > { %s848_s17 = smov %s755_s28  ;;  %s849_s18 = smov %s664_s19 }
 0x184   : > { %s850_s19 = smov %s852_s23  ;;  %16 = sbr.rel (!%p14_p5) target bundleno = 4 (0x4), region = 75 }
 0x18b   :  { %422 = vsyncpa [#allocation3], 1 }
 0x18c   :  { %424 = vsyncpa [#allocation3 + $0x1], 1 }

</bundles_post_ra>
